<compile_context>
chip_gen: v6e
topology: v6e:2x2x1
jax: 0.10.0
libtpu: 0.0.40
codegen_flags: <defaults>
</compile_context>

<pallas_src>
import functools

import jax
import jax.numpy as jnp
from jax.experimental import pallas as pl
from jax.experimental.pallas import tpu as pltpu


# ----------------------------------------------------------------------------
# Kernel
# ----------------------------------------------------------------------------
def _odlae_kernel(n_enc, n_classes, n_dec_rest, enc_out_dims, dec0_out,
                  compute_dtype, *refs):
    """Fused ODLAE forward over one batch tile.

    refs (inputs):  x_tile,
                    (wcat_0, bcat_0) ... (wcat_{n_enc}, bcat_{n_enc})
                        # depth i < n_enc : [encoder_i  | classifier_i]
                        # depth n_enc     : [decoder_0  | classifier_last]
                    (dec_w_1, dec_b_1) ... (dec_w_{n_dec-1}, dec_b_{n_dec-1})
    refs (outputs): out_slab  (TB, (n_enc+1)*n_classes + d_in)
                    column layout: [cls_0 | cls_1 | ... | cls_{n_enc} | recon]
    """
    idx = 0
    x_ref = refs[idx]; idx += 1
    fused = [(refs[idx + 2 * i], refs[idx + 2 * i + 1]) for i in range(n_enc + 1)]
    idx += 2 * (n_enc + 1)
    dec_rest = [(refs[idx + 2 * i], refs[idx + 2 * i + 1]) for i in range(n_dec_rest)]
    idx += 2 * n_dec_rest
    out_ref = refs[idx]

    x = x_ref[...]
    if x.dtype != compute_dtype:
        x = x.astype(compute_dtype)

    # Encoder path: ONE fused matmul per depth -> [encoder_i | classifier_i].
    for i in range(n_enc):
        w, b = fused[i]
        m = enc_out_dims[i]
        h = jnp.dot(x, w[...], preferred_element_type=jnp.float32) + b[...]
        # Off-critical-path classifier tap: store straight into the slab.
        out_ref[:, i * n_classes:(i + 1) * n_classes] = (
            h[:, m:].astype(out_ref.dtype))
        # Forwarded activation is the zero-offset slice -> free view, then ReLU.
        x = jnp.maximum(h[:, :m], 0.0)
        if x.dtype != compute_dtype:
            x = x.astype(compute_dtype)

    # Deepest representation: fused [decoder layer 0 | final classifier].
    w, b = fused[n_enc]
    h = jnp.dot(x, w[...], preferred_element_type=jnp.float32) + b[...]
    out_ref[:, n_enc * n_classes:(n_enc + 1) * n_classes] = (
        h[:, dec0_out:].astype(out_ref.dtype))
    d = h[:, :dec0_out]
    if n_dec_rest > 0:        # decoder layer 0 is followed by ReLU unless it is last
        d = jnp.maximum(d, 0.0)
    for i in range(n_dec_rest):
        if d.dtype != compute_dtype:
            d = d.astype(compute_dtype)
        dw, db = dec_rest[i]
        d = jnp.dot(d, dw[...], preferred_element_type=jnp.float32) + db[...]
        if i < n_dec_rest - 1:
            d = jnp.maximum(d, 0.0)
    out_ref[:, (n_enc + 1) * n_classes:] = d.astype(out_ref.dtype)


# ----------------------------------------------------------------------------
# Tile selection (VMEM-budget derived, v7x-safe)
# ----------------------------------------------------------------------------
def _choose_batch_tile(B, d_in, out_cols, x_itemsize, out_itemsize,
                       resident_weight_bytes, max_tile=4096):
    """Pick the batch tile (multiple of 8 sublanes).

    Sized against the tightest per-TensorCore VMEM across generations
    (v7x: 64 MiB), with ~40% headroom for compiler scratch; also capped at
    ~ceil(B/2) so the "parallel" batch axis yields >= 2 grid steps and both
    v7x TensorCores get work.
    """
    if B <= 8:
        return B
    vmem_budget = int(0.6 * (64 << 20)) - 2 * resident_weight_bytes
    per_row = 2 * (d_in * x_itemsize + out_cols * out_itemsize)   # double-buffered io
    tb = vmem_budget // max(per_row, 1)
    tb = min(tb, max_tile)
    half = (((B + 1) // 2) + 7) // 8 * 8        # >= 2 grid steps (v7x megacore)
    tb = min(tb, half)
    return max(8, (tb // 8) * 8)


# ----------------------------------------------------------------------------
# Wrapper
# ----------------------------------------------------------------------------
def odlae_forward(x, enc_params, cls_params, dec_params, *,
                  weight_dtype=jnp.float32, activation_dtype=None,
                  out_dtype=jnp.float32, max_batch_tile=4096):
    """Run the fused ODLAE forward pass.

    Returns (output_list, recon_x) matching the PyTorch module.

    dtype policy:
      * weight_dtype     : storage/MXU dtype of all weights & biases.
      * activation_dtype : dtype of both dot operands (defaults to weight_dtype);
                           accumulation is always f32 via preferred_element_type.
                           Use bf16 on v6e/v7x; keep f32 activations on v5e.
      * out_dtype        : output slab dtype (bf16 is a large HBM-write win when
                           downstream tolerates it; f32 here for exact checking).
    """
    n_enc = len(enc_params)
    n_cls = len(cls_params)          # == n_enc + 1
    n_dec = len(dec_params)
    assert n_cls == n_enc + 1 and n_dec >= 1
    B, d_in = x.shape
    n_classes = cls_params[0][0].shape[1]
    if activation_dtype is None:
        activation_dtype = weight_dtype

    cast_w = lambda a: a.astype(weight_dtype)

    # Fuse each classifier with the matmul consuming the same activation,
    # ordered [consumer | classifier] so the forwarded slice has zero lane offset.
    fused_params, enc_out_dims = [], []
    for i in range(n_enc):
        ew, eb = enc_params[i]
        cw, cb = cls_params[i]
        enc_out_dims.append(int(ew.shape[1]))
        fused_params.append((cast_w(jnp.concatenate([ew, cw], axis=1)),
                             cast_w(jnp.concatenate([eb, cb], axis=1))))
    dw0, db0 = dec_params[0]
    cw, cb = cls_params[-1]
    dec0_out = int(dw0.shape[1])
    fused_params.append((cast_w(jnp.concatenate([dw0, cw], axis=1)),
                         cast_w(jnp.concatenate([db0, cb], axis=1))))
    dec_rest = [(cast_w(w), cast_w(b)) for (w, b) in dec_params[1:]]
    all_wb = fused_params + dec_rest

    out_cols = n_cls * n_classes + d_in

    # Stream x at the activation dtype (halves the HBM read on bf16 runs).
    x_stream = x if x.dtype == jnp.dtype(activation_dtype) else x.astype(activation_dtype)
    x_itemsize = x_stream.dtype.itemsize
    out_itemsize = jnp.dtype(out_dtype).itemsize
    weight_bytes = sum(int(w.size) * w.dtype.itemsize + int(b.size) * b.dtype.itemsize
                       for w, b in all_wb)

    tb = _choose_batch_tile(B, d_in, out_cols, x_itemsize, out_itemsize,
                            weight_bytes, max_tile=max_batch_tile)
    grid = (pl.cdiv(B, tb),)

    tile_bytes = tb * (d_in * x_itemsize + out_cols * out_itemsize)
    vmem_limit = int(min(max(2 * weight_bytes + 2 * tile_bytes + (4 << 20), 32 << 20),
                         48 << 20))

    flops = 2 * B * sum(int(w.shape[0]) * int(w.shape[1]) for w, _ in all_wb)
    bytes_accessed = int(B * d_in * x_itemsize + B * out_cols * out_itemsize
                         + weight_bytes)
    cost = pl.CostEstimate(flops=flops, transcendentals=0,
                           bytes_accessed=bytes_accessed)

    kernel = functools.partial(_odlae_kernel, n_enc, n_classes, len(dec_rest),
                               tuple(enc_out_dims), dec0_out,
                               jnp.dtype(activation_dtype))

    flat_inputs = [x_stream]
    for w, b in all_wb:
        flat_inputs += [w, b]

    const_map = lambda i: (0, 0)

    def run(single_buffer_weights):
        if single_buffer_weights:
            # Weights never change across the grid -> single-buffer them.
            wspec = lambda a: pl.BlockSpec(a.shape, const_map,
                                           pipeline_mode=pl.Buffered(1))
        else:
            wspec = lambda a: pl.BlockSpec(a.shape, const_map)
        in_specs = [pl.BlockSpec((tb, d_in), lambda i: (i, 0))]
        for w, b in all_wb:
            in_specs += [wspec(w), wspec(b)]
        return pl.pallas_call(
            kernel,
            out_shape=jax.ShapeDtypeStruct((B, out_cols), out_dtype),
            grid=grid,
            in_specs=in_specs,
            out_specs=pl.BlockSpec((tb, out_cols), lambda i: (i, 0)),
            compiler_params=pltpu.CompilerParams(
                dimension_semantics=("parallel",),       # megacore shard on v7x
                vmem_limit_bytes=vmem_limit),
            cost_estimate=cost,
        )(*flat_inputs)

    try:
        slab = run(True)
    except Exception:
        # Fallback if this JAX build rejects pipeline_mode on BlockSpec.
        slab = run(False)

    output_list = [slab[:, i * n_classes:(i + 1) * n_classes] for i in range(n_cls)]
    recon_x = slab[:, n_cls * n_classes:]
    return output_list, recon_x


# ----------------------------------------------------------------------------
# Deterministic parameter init (synthetic, PyTorch-Linear-like uniform init)
# ----------------------------------------------------------------------------
def _init_linear(key, fan_in, fan_out):
    kw, kb = jax.random.split(key)
    bound = 1.0 / jnp.sqrt(fan_in)
    w = jax.random.uniform(kw, (fan_in, fan_out), jnp.float32, -bound, bound)
    b = jax.random.uniform(kb, (1, fan_out), jnp.float32, -bound, bound)
    return w, b


def make_params(key, encoder_args, n_classes):
    decoder_args = encoder_args[::-1]
    keys = jax.random.split(
        key, (len(encoder_args) - 1) + len(encoder_args) + (len(decoder_args) - 1)
    )
    k = 0
    enc_params = []
    for i in range(len(encoder_args) - 1):
        enc_params.append(_init_linear(keys[k], encoder_args[i], encoder_args[i + 1]))
        k += 1
    cls_params = []
    for i in range(len(encoder_args)):
        cls_params.append(_init_linear(keys[k], encoder_args[i], n_classes))
        k += 1
    dec_params = []
    for i in range(len(decoder_args) - 1):
        dec_params.append(_init_linear(keys[k], decoder_args[i], decoder_args[i + 1]))
        k += 1
    return enc_params, cls_params, dec_params


# ----------------------------------------------------------------------------
# Pure-JAX reference (for correctness check)
# ----------------------------------------------------------------------------
def odlae_ref(x, enc_params, cls_params, dec_params):
    x = x.astype(jnp.float32)
    outs = []
    for i, (ew, eb) in enumerate(enc_params):
        cw, cb = cls_params[i]
        outs.append(x @ cw + cb)
        x = jnp.maximum(x @ ew + eb, 0.0)
    cw, cb = cls_params[-1]
    outs.append(x @ cw + cb)
    h = x
    for i, (dw, db) in enumerate(dec_params):
        h = h @ dw + db
        if i < len(dec_params) - 1:
            h = jnp.maximum(h, 0.0)
    return outs, h


if __name__ == "__main__":
    # Small shapes consistent with the module: MLP over feature vectors.
    B = 2
    encoder_args = (32, 16, 8)   # d_in=32 -> h1=16 -> h2=8
    n_classes = 4

    key = jax.random.PRNGKey(0)
    kx, kp = jax.random.split(key)
    x = jax.random.normal(kx, (B, encoder_args[0]), jnp.float32)
    enc_params, cls_params, dec_params = make_params(kp, encoder_args, n_classes)

    # f32 everywhere so the result matches the reference exactly; on v6e/v7x
    # pass weight_dtype=jnp.bfloat16 (and optionally out_dtype=jnp.bfloat16)
    # for the bandwidth-bound fast path.
    output_list, recon_x = odlae_forward(x, enc_params, cls_params, dec_params)
    jax.block_until_ready(recon_x)
    for o in output_list:
        jax.block_until_ready(o)

    # Verify against pure-JAX reference.
    ref_outs, ref_recon = odlae_ref(x, enc_params, cls_params, dec_params)
    for got, want in zip(output_list, ref_outs):
        assert jnp.allclose(got, want, atol=1e-4, rtol=1e-4), "classifier mismatch"
    assert jnp.allclose(recon_x, ref_recon, atol=1e-4, rtol=1e-4), "recon mismatch"

    # TODO(synk): ODLAE.loss() (hedge alpha / beta bookkeeping) is training-time
    # host-side state, not part of the forward pass, so it is not kernelized.
    print("KERNEL_OK")
</pallas_src>

<mosaic_0001>
module attributes {stable_mosaic.version = 11 : i64} {
  func.func @_odlae_kernel(%arg0: i32, %arg1: memref<2x32xf32, #tpu.memory_space<vmem>>, %arg2: memref<32x20xf32, #tpu.memory_space<vmem>>, %arg3: memref<1x20xf32, #tpu.memory_space<vmem>>, %arg4: memref<16x12xf32, #tpu.memory_space<vmem>>, %arg5: memref<1x12xf32, #tpu.memory_space<vmem>>, %arg6: memref<8x20xf32, #tpu.memory_space<vmem>>, %arg7: memref<1x20xf32, #tpu.memory_space<vmem>>, %arg8: memref<16x32xf32, #tpu.memory_space<vmem>>, %arg9: memref<1x32xf32, #tpu.memory_space<vmem>>, %arg10: memref<2x44xf32, #tpu.memory_space<vmem>>) attributes {dimension_semantics = [#tpu.dimension_semantics<parallel>], iteration_bounds = array<i64: 1>, scalar_prefetch = 0 : i64, scratch_operands = 0 : i64, tpu.core_type = #tpu.core_type<tc>, window_params = [{transform_indices = @transform_0, window_bounds = array<i64: 2, 32>}, {pipeline_mode = #tpu.pipeline_mode<synchronous>, transform_indices = @transform_1, window_bounds = array<i64: 32, 20>}, {pipeline_mode = #tpu.pipeline_mode<synchronous>, transform_indices = @transform_2, window_bounds = array<i64: 1, 20>}, {pipeline_mode = #tpu.pipeline_mode<synchronous>, transform_indices = @transform_3, window_bounds = array<i64: 16, 12>}, {pipeline_mode = #tpu.pipeline_mode<synchronous>, transform_indices = @transform_4, window_bounds = array<i64: 1, 12>}, {pipeline_mode = #tpu.pipeline_mode<synchronous>, transform_indices = @transform_5, window_bounds = array<i64: 8, 20>}, {pipeline_mode = #tpu.pipeline_mode<synchronous>, transform_indices = @transform_6, window_bounds = array<i64: 1, 20>}, {pipeline_mode = #tpu.pipeline_mode<synchronous>, transform_indices = @transform_7, window_bounds = array<i64: 16, 32>}, {pipeline_mode = #tpu.pipeline_mode<synchronous>, transform_indices = @transform_8, window_bounds = array<i64: 1, 32>}, {transform_indices = @transform_9, window_bounds = array<i64: 2, 44>}]} {
    %c0 = arith.constant 0 : index
    %c0_0 = arith.constant 0 : index
    %0 = vector.load %arg1[%c0, %c0_0] : memref<2x32xf32, #tpu.memory_space<vmem>>, vector<2x32xf32>
    %c0_1 = arith.constant 0 : index
    %c0_2 = arith.constant 0 : index
    %1 = vector.load %arg2[%c0_1, %c0_2] : memref<32x20xf32, #tpu.memory_space<vmem>>, vector<32x20xf32>
    %cst = arith.constant dense<0.000000e+00> : vector<2x20xf32>
    %2 = tpu.matmul %0, %1, %cst {dimension_numbers = #tpu.dot_dimension_numbers<[1], [0], [0], [1], [0, 0, 1, 1], [], []>} : vector<2x32xf32>, vector<32x20xf32>, vector<2x20xf32> -> vector<2x20xf32>
    %c0_3 = arith.constant 0 : index
    %c0_4 = arith.constant 0 : index
    %3 = vector.load %arg3[%c0_3, %c0_4] : memref<1x20xf32, #tpu.memory_space<vmem>>, vector<1x20xf32>
    %4 = vector.broadcast %3 : vector<1x20xf32> to vector<2x20xf32>
    %5 = arith.addf %2, %4 : vector<2x20xf32>
    %6 = vector.extract_strided_slice %5 {offsets = [0, 16], sizes = [2, 4], strides = [1, 1]} : vector<2x20xf32> to vector<2x4xf32>
    %c0_5 = arith.constant 0 : index
    %c0_6 = arith.constant 0 : index
    %7 = vector.load %arg10[%c0_5, %c0_6] : memref<2x44xf32, #tpu.memory_space<vmem>>, vector<2x4xf32>
    tpu.vector_store %arg10[%c0_5, %c0_6], %6 {strides = array<i32>} : memref<2x44xf32, #tpu.memory_space<vmem>>, vector<2x4xf32>,
    %8 = vector.extract_strided_slice %5 {offsets = [0, 0], sizes = [2, 16], strides = [1, 1]} : vector<2x20xf32> to vector<2x16xf32>
    %cst_7 = arith.constant 0.000000e+00 : f32
    %9 = vector.broadcast %cst_7 : f32 to vector<2x16xf32>
    %10 = arith.maximumf %8, %9 : vector<2x16xf32>
    %c0_8 = arith.constant 0 : index
    %c0_9 = arith.constant 0 : index
    %11 = vector.load %arg4[%c0_8, %c0_9] : memref<16x12xf32, #tpu.memory_space<vmem>>, vector<16x12xf32>
    %cst_10 = arith.constant dense<0.000000e+00> : vector<2x12xf32>
    %12 = tpu.matmul %10, %11, %cst_10 {dimension_numbers = #tpu.dot_dimension_numbers<[1], [0], [0], [1], [0, 0, 1, 1], [], []>} : vector<2x16xf32>, vector<16x12xf32>, vector<2x12xf32> -> vector<2x12xf32>
    %c0_11 = arith.constant 0 : index
    %c0_12 = arith.constant 0 : index
    %13 = vector.load %arg5[%c0_11, %c0_12] : memref<1x12xf32, #tpu.memory_space<vmem>>, vector<1x12xf32>
    %14 = vector.broadcast %13 : vector<1x12xf32> to vector<2x12xf32>
    %15 = arith.addf %12, %14 : vector<2x12xf32>
    %16 = vector.extract_strided_slice %15 {offsets = [0, 8], sizes = [2, 4], strides = [1, 1]} : vector<2x12xf32> to vector<2x4xf32>
    %c0_13 = arith.constant 0 : index
    %c4 = arith.constant 4 : index
    %17 = vector.load %arg10[%c0_13, %c4] : memref<2x44xf32, #tpu.memory_space<vmem>>, vector<2x4xf32>
    tpu.vector_store %arg10[%c0_13, %c4], %16 {strides = array<i32>} : memref<2x44xf32, #tpu.memory_space<vmem>>, vector<2x4xf32>,
    %18 = vector.extract_strided_slice %15 {offsets = [0, 0], sizes = [2, 8], strides = [1, 1]} : vector<2x12xf32> to vector<2x8xf32>
    %cst_14 = arith.constant 0.000000e+00 : f32
    %19 = vector.broadcast %cst_14 : f32 to vector<2x8xf32>
    %20 = arith.maximumf %18, %19 : vector<2x8xf32>
    %c0_15 = arith.constant 0 : index
    %c0_16 = arith.constant 0 : index
    %21 = vector.load %arg6[%c0_15, %c0_16] : memref<8x20xf32, #tpu.memory_space<vmem>>, vector<8x20xf32>
    %cst_17 = arith.constant dense<0.000000e+00> : vector<2x20xf32>
    %22 = tpu.matmul %20, %21, %cst_17 {dimension_numbers = #tpu.dot_dimension_numbers<[1], [0], [0], [1], [0, 0, 1, 1], [], []>} : vector<2x8xf32>, vector<8x20xf32>, vector<2x20xf32> -> vector<2x20xf32>
    %c0_18 = arith.constant 0 : index
    %c0_19 = arith.constant 0 : index
    %23 = vector.load %arg7[%c0_18, %c0_19] : memref<1x20xf32, #tpu.memory_space<vmem>>, vector<1x20xf32>
    %24 = vector.broadcast %23 : vector<1x20xf32> to vector<2x20xf32>
    %25 = arith.addf %22, %24 : vector<2x20xf32>
    %26 = vector.extract_strided_slice %25 {offsets = [0, 16], sizes = [2, 4], strides = [1, 1]} : vector<2x20xf32> to vector<2x4xf32>
    %c0_20 = arith.constant 0 : index
    %c8 = arith.constant 8 : index
    %27 = vector.load %arg10[%c0_20, %c8] : memref<2x44xf32, #tpu.memory_space<vmem>>, vector<2x4xf32>
    tpu.vector_store %arg10[%c0_20, %c8], %26 {strides = array<i32>} : memref<2x44xf32, #tpu.memory_space<vmem>>, vector<2x4xf32>,
    %28 = vector.extract_strided_slice %25 {offsets = [0, 0], sizes = [2, 16], strides = [1, 1]} : vector<2x20xf32> to vector<2x16xf32>
    %cst_21 = arith.constant 0.000000e+00 : f32
    %29 = vector.broadcast %cst_21 : f32 to vector<2x16xf32>
    %30 = arith.maximumf %28, %29 : vector<2x16xf32>
    %c0_22 = arith.constant 0 : index
    %c0_23 = arith.constant 0 : index
    %31 = vector.load %arg8[%c0_22, %c0_23] : memref<16x32xf32, #tpu.memory_space<vmem>>, vector<16x32xf32>
    %cst_24 = arith.constant dense<0.000000e+00> : vector<2x32xf32>
    %32 = tpu.matmul %30, %31, %cst_24 {dimension_numbers = #tpu.dot_dimension_numbers<[1], [0], [0], [1], [0, 0, 1, 1], [], []>} : vector<2x16xf32>, vector<16x32xf32>, vector<2x32xf32> -> vector<2x32xf32>
    %c0_25 = arith.constant 0 : index
    %c0_26 = arith.constant 0 : index
    %33 = vector.load %arg9[%c0_25, %c0_26] : memref<1x32xf32, #tpu.memory_space<vmem>>, vector<1x32xf32>
    %34 = vector.broadcast %33 : vector<1x32xf32> to vector<2x32xf32>
    %35 = arith.addf %32, %34 : vector<2x32xf32>
    %c0_27 = arith.constant 0 : index
    %c12 = arith.constant 12 : index
    %36 = vector.load %arg10[%c0_27, %c12] : memref<2x44xf32, #tpu.memory_space<vmem>>, vector<2x32xf32>
    tpu.vector_store %arg10[%c0_27, %c12], %35 {strides = array<i32>} : memref<2x44xf32, #tpu.memory_space<vmem>>, vector<2x32xf32>,
    return
  }
  func.func @transform_0(%arg0: i32) -> (i32, i32) {
    %c0_i32 = arith.constant 0 : i32
    %c0_i32_0 = arith.constant 0 : i32
    return %arg0, %c0_i32 : i32, i32
  }
  func.func @transform_1(%arg0: i32) -> (i32, i32) {
    %c0_i32 = arith.constant 0 : i32
    %c0_i32_0 = arith.constant 0 : i32
    %c0_i32_1 = arith.constant 0 : i32
    return %c0_i32, %c0_i32_0 : i32, i32
  }
  func.func @transform_2(%arg0: i32) -> (i32, i32) {
    %c0_i32 = arith.constant 0 : i32
    %c0_i32_0 = arith.constant 0 : i32
    %c0_i32_1 = arith.constant 0 : i32
    return %c0_i32, %c0_i32_0 : i32, i32
  }
  func.func @transform_3(%arg0: i32) -> (i32, i32) {
    %c0_i32 = arith.constant 0 : i32
    %c0_i32_0 = arith.constant 0 : i32
    %c0_i32_1 = arith.constant 0 : i32
    return %c0_i32, %c0_i32_0 : i32, i32
  }
  func.func @transform_4(%arg0: i32) -> (i32, i32) {
    %c0_i32 = arith.constant 0 : i32
    %c0_i32_0 = arith.constant 0 : i32
    %c0_i32_1 = arith.constant 0 : i32
    return %c0_i32, %c0_i32_0 : i32, i32
  }
  func.func @transform_5(%arg0: i32) -> (i32, i32) {
    %c0_i32 = arith.constant 0 : i32
    %c0_i32_0 = arith.constant 0 : i32
    %c0_i32_1 = arith.constant 0 : i32
    return %c0_i32, %c0_i32_0 : i32, i32
  }
  func.func @transform_6(%arg0: i32) -> (i32, i32) {
    %c0_i32 = arith.constant 0 : i32
    %c0_i32_0 = arith.constant 0 : i32
    %c0_i32_1 = arith.constant 0 : i32
    return %c0_i32, %c0_i32_0 : i32, i32
  }
  func.func @transform_7(%arg0: i32) -> (i32, i32) {
    %c0_i32 = arith.constant 0 : i32
    %c0_i32_0 = arith.constant 0 : i32
    %c0_i32_1 = arith.constant 0 : i32
    return %c0_i32, %c0_i32_0 : i32, i32
  }
  func.func @transform_8(%arg0: i32) -> (i32, i32) {
    %c0_i32 = arith.constant 0 : i32
    %c0_i32_0 = arith.constant 0 : i32
    %c0_i32_1 = arith.constant 0 : i32
    return %c0_i32, %c0_i32_0 : i32, i32
  }
  func.func @transform_9(%arg0: i32) -> (i32, i32) {
    %c0_i32 = arith.constant 0 : i32
    %c0_i32_0 = arith.constant 0 : i32
    return %arg0, %c0_i32 : i32, i32
  }
}

module attributes {stable_mosaic.version = 11 : i64} {
  func.func @_odlae_kernel(%arg0: i32, %arg1: memref<2x32xf32, #tpu.memory_space<vmem>>, %arg2: memref<32x20xf32, #tpu.memory_space<vmem>>, %arg3: memref<1x20xf32, #tpu.memory_space<vmem>>, %arg4: memref<16x12xf32, #tpu.memory_space<vmem>>, %arg5: memref<1x12xf32, #tpu.memory_space<vmem>>, %arg6: memref<8x20xf32, #tpu.memory_space<vmem>>, %arg7: memref<1x20xf32, #tpu.memory_space<vmem>>, %arg8: memref<16x32xf32, #tpu.memory_space<vmem>>, %arg9: memref<1x32xf32, #tpu.memory_space<vmem>>, %arg10: memref<2x44xf32, #tpu.memory_space<vmem>>) attributes {dimension_semantics = [#tpu.dimension_semantics<parallel>], iteration_bounds = array<i64: 1>, scalar_prefetch = 0 : i64, scratch_operands = 0 : i64, tpu.core_type = #tpu.core_type<tc>, window_params = [{transform_indices = @transform_0, window_bounds = array<i64: 2, 32>}, {pipeline_mode = #tpu.pipeline_mode<synchronous>, transform_indices = @transform_1, window_bounds = array<i64: 32, 20>}, {pipeline_mode = #tpu.pipeline_mode<synchronous>, transform_indices = @transform_2, window_bounds = array<i64: 1, 20>}, {pipeline_mode = #tpu.pipeline_mode<synchronous>, transform_indices = @transform_3, window_bounds = array<i64: 16, 12>}, {pipeline_mode = #tpu.pipeline_mode<synchronous>, transform_indices = @transform_4, window_bounds = array<i64: 1, 12>}, {pipeline_mode = #tpu.pipeline_mode<synchronous>, transform_indices = @transform_5, window_bounds = array<i64: 8, 20>}, {pipeline_mode = #tpu.pipeline_mode<synchronous>, transform_indices = @transform_6, window_bounds = array<i64: 1, 20>}, {pipeline_mode = #tpu.pipeline_mode<synchronous>, transform_indices = @transform_7, window_bounds = array<i64: 16, 32>}, {pipeline_mode = #tpu.pipeline_mode<synchronous>, transform_indices = @transform_8, window_bounds = array<i64: 1, 32>}, {transform_indices = @transform_9, window_bounds = array<i64: 2, 44>}]} {
    %c0 = arith.constant 0 : index
    %c0_0 = arith.constant 0 : index
    %0 = vector.load %arg1[%c0, %c0_0] : memref<2x32xf32, #tpu.memory_space<vmem>>, vector<2x32xf32>
    %c0_1 = arith.constant 0 : index
    %c0_2 = arith.constant 0 : index
    %1 = vector.load %arg2[%c0_1, %c0_2] : memref<32x20xf32, #tpu.memory_space<vmem>>, vector<32x20xf32>
    %cst = arith.constant dense<0.000000e+00> : vector<2x20xf32>
    %2 = tpu.matmul %0, %1, %cst {dimension_numbers = #tpu.dot_dimension_numbers<[1], [0], [0], [1], [0, 0, 1, 1], [], []>} : vector<2x32xf32>, vector<32x20xf32>, vector<2x20xf32> -> vector<2x20xf32>
    %c0_3 = arith.constant 0 : index
    %c0_4 = arith.constant 0 : index
    %3 = vector.load %arg3[%c0_3, %c0_4] : memref<1x20xf32, #tpu.memory_space<vmem>>, vector<1x20xf32>
    %4 = vector.broadcast %3 : vector<1x20xf32> to vector<2x20xf32>
    %5 = arith.addf %2, %4 : vector<2x20xf32>
    %6 = vector.extract_strided_slice %5 {offsets = [0, 16], sizes = [2, 4], strides = [1, 1]} : vector<2x20xf32> to vector<2x4xf32>
    %c0_5 = arith.constant 0 : index
    %c0_6 = arith.constant 0 : index
    %7 = vector.load %arg10[%c0_5, %c0_6] : memref<2x44xf32, #tpu.memory_space<vmem>>, vector<2x4xf32>
    tpu.vector_store %arg10[%c0_5, %c0_6], %6 {strides = array<i32>} : memref<2x44xf32, #tpu.memory_space<vmem>>, vector<2x4xf32>,
    %8 = vector.extract_strided_slice %5 {offsets = [0, 0], sizes = [2, 16], strides = [1, 1]} : vector<2x20xf32> to vector<2x16xf32>
    %cst_7 = arith.constant 0.000000e+00 : f32
    %9 = vector.broadcast %cst_7 : f32 to vector<2x16xf32>
    %10 = arith.maximumf %8, %9 : vector<2x16xf32>
    %c0_8 = arith.constant 0 : index
    %c0_9 = arith.constant 0 : index
    %11 = vector.load %arg4[%c0_8, %c0_9] : memref<16x12xf32, #tpu.memory_space<vmem>>, vector<16x12xf32>
    %cst_10 = arith.constant dense<0.000000e+00> : vector<2x12xf32>
    %12 = tpu.matmul %10, %11, %cst_10 {dimension_numbers = #tpu.dot_dimension_numbers<[1], [0], [0], [1], [0, 0, 1, 1], [], []>} : vector<2x16xf32>, vector<16x12xf32>, vector<2x12xf32> -> vector<2x12xf32>
    %c0_11 = arith.constant 0 : index
    %c0_12 = arith.constant 0 : index
    %13 = vector.load %arg5[%c0_11, %c0_12] : memref<1x12xf32, #tpu.memory_space<vmem>>, vector<1x12xf32>
    %14 = vector.broadcast %13 : vector<1x12xf32> to vector<2x12xf32>
    %15 = arith.addf %12, %14 : vector<2x12xf32>
    %16 = vector.extract_strided_slice %15 {offsets = [0, 8], sizes = [2, 4], strides = [1, 1]} : vector<2x12xf32> to vector<2x4xf32>
    %c0_13 = arith.constant 0 : index
    %c4 = arith.constant 4 : index
    %17 = vector.load %arg10[%c0_13, %c4] : memref<2x44xf32, #tpu.memory_space<vmem>>, vector<2x4xf32>
    tpu.vector_store %arg10[%c0_13, %c4], %16 {strides = array<i32>} : memref<2x44xf32, #tpu.memory_space<vmem>>, vector<2x4xf32>,
    %18 = vector.extract_strided_slice %15 {offsets = [0, 0], sizes = [2, 8], strides = [1, 1]} : vector<2x12xf32> to vector<2x8xf32>
    %cst_14 = arith.constant 0.000000e+00 : f32
    %19 = vector.broadcast %cst_14 : f32 to vector<2x8xf32>
    %20 = arith.maximumf %18, %19 : vector<2x8xf32>
    %c0_15 = arith.constant 0 : index
    %c0_16 = arith.constant 0 : index
    %21 = vector.load %arg6[%c0_15, %c0_16] : memref<8x20xf32, #tpu.memory_space<vmem>>, vector<8x20xf32>
    %cst_17 = arith.constant dense<0.000000e+00> : vector<2x20xf32>
    %22 = tpu.matmul %20, %21, %cst_17 {dimension_numbers = #tpu.dot_dimension_numbers<[1], [0], [0], [1], [0, 0, 1, 1], [], []>} : vector<2x8xf32>, vector<8x20xf32>, vector<2x20xf32> -> vector<2x20xf32>
    %c0_18 = arith.constant 0 : index
    %c0_19 = arith.constant 0 : index
    %23 = vector.load %arg7[%c0_18, %c0_19] : memref<1x20xf32, #tpu.memory_space<vmem>>, vector<1x20xf32>
    %24 = vector.broadcast %23 : vector<1x20xf32> to vector<2x20xf32>
    %25 = arith.addf %22, %24 : vector<2x20xf32>
    %26 = vector.extract_strided_slice %25 {offsets = [0, 16], sizes = [2, 4], strides = [1, 1]} : vector<2x20xf32> to vector<2x4xf32>
    %c0_20 = arith.constant 0 : index
    %c8 = arith.constant 8 : index
    %27 = vector.load %arg10[%c0_20, %c8] : memref<2x44xf32, #tpu.memory_space<vmem>>, vector<2x4xf32>
    tpu.vector_store %arg10[%c0_20, %c8], %26 {strides = array<i32>} : memref<2x44xf32, #tpu.memory_space<vmem>>, vector<2x4xf32>,
    %28 = vector.extract_strided_slice %25 {offsets = [0, 0], sizes = [2, 16], strides = [1, 1]} : vector<2x20xf32> to vector<2x16xf32>
    %cst_21 = arith.constant 0.000000e+00 : f32
    %29 = vector.broadcast %cst_21 : f32 to vector<2x16xf32>
    %30 = arith.maximumf %28, %29 : vector<2x16xf32>
    %c0_22 = arith.constant 0 : index
    %c0_23 = arith.constant 0 : index
    %31 = vector.load %arg8[%c0_22, %c0_23] : memref<16x32xf32, #tpu.memory_space<vmem>>, vector<16x32xf32>
    %cst_24 = arith.constant dense<0.000000e+00> : vector<2x32xf32>
    %32 = tpu.matmul %30, %31, %cst_24 {dimension_numbers = #tpu.dot_dimension_numbers<[1], [0], [0], [1], [0, 0, 1, 1], [], []>} : vector<2x16xf32>, vector<16x32xf32>, vector<2x32xf32> -> vector<2x32xf32>
    %c0_25 = arith.constant 0 : index
    %c0_26 = arith.constant 0 : index
    %33 = vector.load %arg9[%c0_25, %c0_26] : memref<1x32xf32, #tpu.memory_space<vmem>>, vector<1x32xf32>
    %34 = vector.broadcast %33 : vector<1x32xf32> to vector<2x32xf32>
    %35 = arith.addf %32, %34 : vector<2x32xf32>
    %c0_27 = arith.constant 0 : index
    %c12 = arith.constant 12 : index
    %36 = vector.load %arg10[%c0_27, %c12] : memref<2x44xf32, #tpu.memory_space<vmem>>, vector<2x32xf32>
    tpu.vector_store %arg10[%c0_27, %c12], %35 {strides = array<i32>} : memref<2x44xf32, #tpu.memory_space<vmem>>, vector<2x32xf32>,
    return
  }
  func.func @transform_0(%arg0: i32) -> (i32, i32) {
    %c0_i32 = arith.constant 0 : i32
    %c0_i32_0 = arith.constant 0 : i32
    return %arg0, %c0_i32 : i32, i32
  }
  func.func @transform_1(%arg0: i32) -> (i32, i32) {
    %c0_i32 = arith.constant 0 : i32
    %c0_i32_0 = arith.constant 0 : i32
    %c0_i32_1 = arith.constant 0 : i32
    return %c0_i32, %c0_i32_0 : i32, i32
  }
  func.func @transform_2(%arg0: i32) -> (i32, i32) {
    %c0_i32 = arith.constant 0 : i32
    %c0_i32_0 = arith.constant 0 : i32
    %c0_i32_1 = arith.constant 0 : i32
    return %c0_i32, %c0_i32_0 : i32, i32
  }
  func.func @transform_3(%arg0: i32) -> (i32, i32) {
    %c0_i32 = arith.constant 0 : i32
    %c0_i32_0 = arith.constant 0 : i32
    %c0_i32_1 = arith.constant 0 : i32
    return %c0_i32, %c0_i32_0 : i32, i32
  }
  func.func @transform_4(%arg0: i32) -> (i32, i32) {
    %c0_i32 = arith.constant 0 : i32
    %c0_i32_0 = arith.constant 0 : i32
    %c0_i32_1 = arith.constant 0 : i32
    return %c0_i32, %c0_i32_0 : i32, i32
  }
  func.func @transform_5(%arg0: i32) -> (i32, i32) {
    %c0_i32 = arith.constant 0 : i32
    %c0_i32_0 = arith.constant 0 : i32
    %c0_i32_1 = arith.constant 0 : i32
    return %c0_i32, %c0_i32_0 : i32, i32
  }
  func.func @transform_6(%arg0: i32) -> (i32, i32) {
    %c0_i32 = arith.constant 0 : i32
    %c0_i32_0 = arith.constant 0 : i32
    %c0_i32_1 = arith.constant 0 : i32
    return %c0_i32, %c0_i32_0 : i32, i32
  }
  func.func @transform_7(%arg0: i32) -> (i32, i32) {
    %c0_i32 = arith.constant 0 : i32
    %c0_i32_0 = arith.constant 0 : i32
    %c0_i32_1 = arith.constant 0 : i32
    return %c0_i32, %c0_i32_0 : i32, i32
  }
  func.func @transform_8(%arg0: i32) -> (i32, i32) {
    %c0_i32 = arith.constant 0 : i32
    %c0_i32_0 = arith.constant 0 : i32
    %c0_i32_1 = arith.constant 0 : i32
    return %c0_i32, %c0_i32_0 : i32, i32
  }
  func.func @transform_9(%arg0: i32) -> (i32, i32) {
    %c0_i32 = arith.constant 0 : i32
    %c0_i32_0 = arith.constant 0 : i32
    return %arg0, %c0_i32 : i32, i32
  }
}

</mosaic_0001>

<bundles_post_ra>
// kernel: tpu_custom_call.1
= control target key start
LH: loop header
LB: loop body
LE: loop exit
PB: predicated region body
PF: predicated region fallthrough
CT: control target
= control target key end

     0   :  { %v487_v1 = vmov 0.0   ;;  %vm488_vm0 = vmmov 0   ;;  %s595_s0 = inlined_call_operand.vmem [shape: f32[2,32], index: 0, kind: input, shape index: {}]   ;;  %s596_s1 = inlined_call_operand.vmem [shape: f32[32,20], index: 1, kind: input, shape index: {}]   ;;  %s597_s2 = inlined_call_operand.vmem [shape: f32[1,20], index: 2, kind: input, shape index: {}]   ;;  %s598_s3 = inlined_call_operand.vmem [shape: f32[16,12], index: 3, kind: input, shape index: {}]   ;;  %s599_s4 = inlined_call_operand.vmem [shape: f32[1,12], index: 4, kind: input, shape index: {}]   ;;  %s600_s5 = inlined_call_operand.vmem [shape: f32[8,20], index: 5, kind: input, shape index: {}]   ;;  %s601_s6 = inlined_call_operand.vmem [shape: f32[1,20], index: 6, kind: input, shape index: {}]   ;;  %s602_s7 = inlined_call_operand.vmem [shape: f32[16,32], index: 7, kind: input, shape index: {}]   ;;  %s603_s8 = inlined_call_operand.vmem [shape: f32[1,32], index: 8, kind: input, shape index: {}]   ;;  %s604_s9 = inlined_call_operand.hbm [shape: f32[2,44], index: 9, kind: output, shape index: {}]  }
   0x1   :  { %v37_v0 = vld [vmem:[%s596_s1 + $0x18] sm:$0xff]  ;;  %428 = vmatprep.subr.mxu0 %v487_v1  ;;  %v36_v2 = vld [vmem:[%s596_s1 + $0x10] sm:$0xff]  ;;  %436 = vmatprep.mubr.msk.f32.mxu0 %vm488_vm0, %v487_v1 }
   0x2   :  { %429 = vmatpush3.msra.mxu0 %v37_v0  ;;  %439 = vmatprep.subr.mxu1 %v487_v1 }
   0x3   :  { %14 = vsyncpa [#allocation3], 0  ;;  %430 = vmatprep.subr.mxu0 %v487_v1  ;;  %v35_v3 = vld [vmem:[%s596_s1 + $0x8] sm:$0xff]  ;;  %443 = vmatprep.mubr.msk.f32.mxu1 %vm488_vm0, %v487_v1  ;;  %v34_v4 = vld [vmem:[%s596_s1] sm:$0xff]  ;;  %vm45_vm1 = vcmask 261120   ;;  %vm135_vm2 = vcmask 130048  }
   0x4   :  { %431 = vmatpush3.msra.mxu0 %v36_v2  ;;  %v33_v5 = vld [vmem:[%s595_s0] sm:$0x3]  ;;  %v127_v6 = vld [vmem:[%s598_s3 + $0x8] sm:$0xff]  ;;  %s489_s23 = smov 112   ;;  %vm123_vm3 = vcmask 25600   ;;  %vm224_vm4 = vcmask 64512  }
   0x5   :  { %432 = vmatprep.subr.mxu0 %v487_v1  ;;  %440 = vmatpush3.msra.mxu1 %v127_v6  ;;  %v126_v7 = vld [vmem:[%s598_s3] sm:$0xff]  ;;  %s490_s26 = smov 124   ;;  %v306_v20 = vld [vmem:[%s602_s7 + $0x8] sm:$0xff]  ;;  %vm213_vm5 = vcmask 58400   ;;  %s491_s10 = smov 120   ;;  %vm302_vm6 = vcmask 91200  }
   0x6   :  { %433 = vmatpush3.msra.mxu0 %v35_v3  ;;  %441 = vmatprep.subr.mxu1 %v487_v1  ;;  %v407_v8 = vld [vmem:[%s597_s2] ss:$0 sm:$0xff]  ;;  %s492_s12 = smov 12   ;;  %vm391_vm7 = vcmask 353376  }
   0x7   :  { %434 = vmatprep.subr.mxu0 %v487_v1  ;;  %442 = vmatpush3.msra.mxu1 %v126_v7  ;;  %v216_v13 = vld [vmem:[%s600_s5] sm:$0xff] }
   0x8   :  { %435 = vmatpush3.msra.mxu0 %v34_v4  ;;  %446 = vmatprep.subr.mxu1 %v487_v1  ;;  %v409_v15 = vld [vmem:[%s599_s4] ss:$0 sm:$0xff] }
   0x9   :  { %437 = vmatmul.mubr.msk.f32.vlgmr.msra.gmra.mxu0 %vm45_vm1, %v33_v5  ;;  %451 = vmatprep.subr.mxu0 %v487_v1  ;;  %v305_v21 = vld [vmem:[%s602_s7] sm:$0xff] }
   0xa   :  { %455 = vmatprep.mubr.msk.f32.mxu0 %vm488_vm0, %v487_v1  ;;  %452 = vmatpush3.msra.mxu0 %v306_v20  ;;  %v411_v23 = vld [vmem:[%s601_s6] ss:$0 sm:$0xff]  ;;  %s493_s6 = smov [#allocation2]  }
   0xb   :  { %453 = vmatprep.subr.mxu0 %v487_v1  ;;  %v413_v29 = vld [vmem:[%s603_s8] ss:$0 sm:$0xff]  ;;  %s399_s13 = sshll.u32 %s493_s6, 4  ;;  %s400_s13 = int_to_ptr.vmem [resolvable:$true] %s399_s13 }
   0xc   :  { %454 = vmatpush3.msra.mxu0 %v305_v21  ;;  %s465_s14 = scalar_lea.vmem %s400_s13, 32  ;;  %p470_p1 = scmp.lt.s32.totalorder %s400_s13, %s400_s13 }
   0xd   :  { %p466_p0 = scmp.ne.s32.totalorder %s400_s13, %s465_s14  ;;  %p471_p2 = scmp.lt.s32.totalorder %s465_s14, %s465_s14 }
   0xf   :  { %p472_p3 = por %p471_p2, %p470_p1 }
  0x11   :  { %p473_p4 = pnand %p472_p3, %p466_p0 }
  0xc9   :  { %v115_v9 = vpop.f32.mrf.mxu0 }
  0xca   :  { %v116_v10 = vadd.f32 %v407_v8, %v115_v9 }
  0xcb   :  { %v438_v11 = vpop.f32.mrf.mxu0 }
  0xcc   :  { %v125_v12 = vmax.f32 %v116_v10, 0.0  ;;  %120 = vrot.lane.b32.xlu0 %v116_v10, %s489_s23 }
  0xce   :  { %444 = vmatmul.mubr.msk.f32.vlgmr.msra.gmra.mxu1 %vm135_vm2, %v125_v12 }
  0xcf   :  { %448 = vmatprep.mubr.msk.f32.mxu1 %vm488_vm0, %v487_v1  ;;  %447 = vmatpush3.msra.mxu1 %v216_v13 }
 0x13e   :  { %v121_v14 = vpop.permute.xlu0 %120 }
 0x13f   :  { %124 = vst.msk [vmem:[#allocation2] sm:$0x3] %vm123_vm3, %v121_v14 }
 0x18e   :  { %v205_v16 = vpop.f32.mrf.mxu1 }
 0x18f   :  { %v206_v17 = vadd.f32 %v409_v15, %v205_v16 }
 0x190   :  { %v445_v18 = vpop.f32.mrf.mxu1 }
 0x191   :  { %v215_v19 = vmax.f32 %v206_v17, 0.0  ;;  %210 = vrot.lane.b32.xlu0 %v206_v17, %s490_s26 }
 0x193   :  { %449 = vmatmul.mubr.msk.f32.vlgmr.msra.gmra.mxu1 %vm224_vm4, %v215_v19 }
 0x203   :  { %v211_v22 = vpop.permute.xlu0 %210 }
 0x204   :  { %214 = vst.msk [vmem:[#allocation2] sm:$0x3] %vm213_vm5, %v211_v22 }
 0x253   :  { %v294_v24 = vpop.f32.mrf.mxu1 }
 0x254   :  { %v295_v25 = vadd.f32 %v411_v23, %v294_v24 }
 0x255   :  { %v450_v26 = vpop.f32.mrf.mxu1 }
 0x256   :  { %v304_v27 = vmax.f32 %v295_v25, 0.0  ;;  %299 = vrot.lane.b32.xlu1 %v295_v25, %s491_s10 }
 0x258   :  { %456 = vmatmul.mubr.msk.f32.vlgmr.msra.gmra.mxu0 %vm135_vm2, %v304_v27 }
 0x2c8   :  { %v300_v28 = vpop.permute.xlu1 %299 }
 0x2c9   :  { %303 = vst.msk [vmem:[#allocation2] sm:$0x3] %vm302_vm6, %v300_v28 }
 0x318   :  { %v383_v30 = vpop.f32.mrf.mxu0 }
 0x319   :  { %v384_v31 = vadd.f32 %v413_v29, %v383_v30 }
 0x31a   :  { %v457_v32 = vpop.f32.mrf.mxu0 }
 0x31b   :  { %388 = vrot.lane.b32.xlu1 %v384_v31, %s492_s12 }
 0x38d   :  { %v389_v33 = vpop.permute.xlu1 %388 }
 0x38e   :  { %392 = vst.msk [vmem:[#allocation2] sm:$0x3] %vm391_vm7, %v389_v33 }
 0x38f   :  { %476 = shalt.err (!%p473_p4)
}
 0x390   :  { %402 = dma.vmem_to_hbm [thread:$0]  %s400_s13, 32, %s604_s9, [#allocation3]  }
 0x391   :  { %485 = dma.done.wait [#allocation3], 32  }
 0x392   :  { %486 = vsyncadd [#allocation3], 4294967264 }
 0x393   :  { %406 = vsyncpa [#allocation3], 1 }

// kernel: tpu_custom_call.1
= control target key start
LH: loop header
LB: loop body
LE: loop exit
PB: predicated region body
PF: predicated region fallthrough
CT: control target
= control target key end

     0   :  { %v487_v1 = vmov 0.0   ;;  %vm488_vm0 = vmmov 0   ;;  %s595_s0 = inlined_call_operand.vmem [shape: f32[2,32], index: 0, kind: input, shape index: {}]   ;;  %s596_s1 = inlined_call_operand.vmem [shape: f32[32,20], index: 1, kind: input, shape index: {}]   ;;  %s597_s2 = inlined_call_operand.vmem [shape: f32[1,20], index: 2, kind: input, shape index: {}]   ;;  %s598_s3 = inlined_call_operand.vmem [shape: f32[16,12], index: 3, kind: input, shape index: {}]   ;;  %s599_s4 = inlined_call_operand.vmem [shape: f32[1,12], index: 4, kind: input, shape index: {}]   ;;  %s600_s5 = inlined_call_operand.vmem [shape: f32[8,20], index: 5, kind: input, shape index: {}]   ;;  %s601_s6 = inlined_call_operand.vmem [shape: f32[1,20], index: 6, kind: input, shape index: {}]   ;;  %s602_s7 = inlined_call_operand.vmem [shape: f32[16,32], index: 7, kind: input, shape index: {}]   ;;  %s603_s8 = inlined_call_operand.vmem [shape: f32[1,32], index: 8, kind: input, shape index: {}]   ;;  %s604_s9 = inlined_call_operand.hbm [shape: f32[2,44], index: 9, kind: output, shape index: {}]  }
   0x1   :  { %v37_v0 = vld [vmem:[%s596_s1 + $0x18] sm:$0xff]  ;;  %428 = vmatprep.subr.mxu0 %v487_v1  ;;  %v36_v2 = vld [vmem:[%s596_s1 + $0x10] sm:$0xff]  ;;  %436 = vmatprep.mubr.msk.f32.mxu0 %vm488_vm0, %v487_v1 }
   0x2   :  { %429 = vmatpush3.msra.mxu0 %v37_v0  ;;  %439 = vmatprep.subr.mxu1 %v487_v1 }
   0x3   :  { %14 = vsyncpa [#allocation3], 0  ;;  %430 = vmatprep.subr.mxu0 %v487_v1  ;;  %v35_v3 = vld [vmem:[%s596_s1 + $0x8] sm:$0xff]  ;;  %443 = vmatprep.mubr.msk.f32.mxu1 %vm488_vm0, %v487_v1  ;;  %v34_v4 = vld [vmem:[%s596_s1] sm:$0xff]  ;;  %vm45_vm1 = vcmask 261120   ;;  %vm135_vm2 = vcmask 130048  }
   0x4   :  { %431 = vmatpush3.msra.mxu0 %v36_v2  ;;  %v33_v5 = vld [vmem:[%s595_s0] sm:$0x3]  ;;  %v127_v6 = vld [vmem:[%s598_s3 + $0x8] sm:$0xff]  ;;  %s489_s23 = smov 112   ;;  %vm123_vm3 = vcmask 25600   ;;  %vm224_vm4 = vcmask 64512  }
   0x5   :  { %432 = vmatprep.subr.mxu0 %v487_v1  ;;  %440 = vmatpush3.msra.mxu1 %v127_v6  ;;  %v126_v7 = vld [vmem:[%s598_s3] sm:$0xff]  ;;  %s490_s26 = smov 124   ;;  %v306_v20 = vld [vmem:[%s602_s7 + $0x8] sm:$0xff]  ;;  %vm213_vm5 = vcmask 58400   ;;  %s491_s10 = smov 120   ;;  %vm302_vm6 = vcmask 91200  }
   0x6   :  { %433 = vmatpush3.msra.mxu0 %v35_v3  ;;  %441 = vmatprep.subr.mxu1 %v487_v1  ;;  %v407_v8 = vld [vmem:[%s597_s2] ss:$0 sm:$0xff]  ;;  %s492_s12 = smov 12   ;;  %vm391_vm7 = vcmask 353376  }
   0x7   :  { %434 = vmatprep.subr.mxu0 %v487_v1  ;;  %442 = vmatpush3.msra.mxu1 %v126_v7  ;;  %v216_v13 = vld [vmem:[%s600_s5] sm:$0xff] }
   0x8   :  { %435 = vmatpush3.msra.mxu0 %v34_v4  ;;  %446 = vmatprep.subr.mxu1 %v487_v1  ;;  %v409_v15 = vld [vmem:[%s599_s4] ss:$0 sm:$0xff] }
   0x9   :  { %437 = vmatmul.mubr.msk.f32.vlgmr.msra.gmra.mxu0 %vm45_vm1, %v33_v5  ;;  %451 = vmatprep.subr.mxu0 %v487_v1  ;;  %v305_v21 = vld [vmem:[%s602_s7] sm:$0xff] }
   0xa   :  { %455 = vmatprep.mubr.msk.f32.mxu0 %vm488_vm0, %v487_v1  ;;  %452 = vmatpush3.msra.mxu0 %v306_v20  ;;  %v411_v23 = vld [vmem:[%s601_s6] ss:$0 sm:$0xff]  ;;  %s493_s6 = smov [#allocation2]  }
   0xb   :  { %453 = vmatprep.subr.mxu0 %v487_v1  ;;  %v413_v29 = vld [vmem:[%s603_s8] ss:$0 sm:$0xff]  ;;  %s399_s13 = sshll.u32 %s493_s6, 4  ;;  %s400_s13 = int_to_ptr.vmem [resolvable:$true] %s399_s13 }
   0xc   :  { %454 = vmatpush3.msra.mxu0 %v305_v21  ;;  %s465_s14 = scalar_lea.vmem %s400_s13, 32  ;;  %p470_p1 = scmp.lt.s32.totalorder %s400_s13, %s400_s13 }
   0xd   :  { %p466_p0 = scmp.ne.s32.totalorder %s400_s13, %s465_s14  ;;  %p471_p2 = scmp.lt.s32.totalorder %s465_s14, %s465_s14 }
   0xf   :  { %p472_p3 = por %p471_p2, %p470_p1 }
  0x11   :  { %p473_p4 = pnand %p472_p3, %p466_p0 }
  0xc9   :  { %v115_v9 = vpop.f32.mrf.mxu0 }
  0xca   :  { %v116_v10 = vadd.f32 %v407_v8, %v115_v9 }
  0xcb   :  { %v438_v11 = vpop.f32.mrf.mxu0 }
  0xcc   :  { %v125_v12 = vmax.f32 %v116_v10, 0.0  ;;  %120 = vrot.lane.b32.xlu0 %v116_v10, %s489_s23 }
  0xce   :  { %444 = vmatmul.mubr.msk.f32.vlgmr.msra.gmra.mxu1 %vm135_vm2, %v125_v12 }
  0xcf   :  { %448 = vmatprep.mubr.msk.f32.mxu1 %vm488_vm0, %v487_v1  ;;  %447 = vmatpush3.msra.mxu1 %v216_v13 }
 0x13e   :  { %v121_v14 = vpop.permute.xlu0 %120 }
 0x13f   :  { %124 = vst.msk [vmem:[#allocation2] sm:$0x3] %vm123_vm3, %v121_v14 }
 0x18e   :  { %v205_v16 = vpop.f32.mrf.mxu1 }
 0x18f   :  { %v206_v17 = vadd.f32 %v409_v15, %v205_v16 }
 0x190   :  { %v445_v18 = vpop.f32.mrf.mxu1 }
 0x191   :  { %v215_v19 = vmax.f32 %v206_v17, 0.0  ;;  %210 = vrot.lane.b32.xlu0 %v206_v17, %s490_s26 }
 0x193   :  { %449 = vmatmul.mubr.msk.f32.vlgmr.msra.gmra.mxu1 %vm224_vm4, %v215_v19 }
 0x203   :  { %v211_v22 = vpop.permute.xlu0 %210 }
 0x204   :  { %214 = vst.msk [vmem:[#allocation2] sm:$0x3] %vm213_vm5, %v211_v22 }
 0x253   :  { %v294_v24 = vpop.f32.mrf.mxu1 }
 0x254   :  { %v295_v25 = vadd.f32 %v411_v23, %v294_v24 }
 0x255   :  { %v450_v26 = vpop.f32.mrf.mxu1 }
 0x256   :  { %v304_v27 = vmax.f32 %v295_v25, 0.0  ;;  %299 = vrot.lane.b32.xlu1 %v295_v25, %s491_s10 }
 0x258   :  { %456 = vmatmul.mubr.msk.f32.vlgmr.msra.gmra.mxu0 %vm135_vm2, %v304_v27 }
 0x2c8   :  { %v300_v28 = vpop.permute.xlu1 %299 }
 0x2c9   :  { %303 = vst.msk [vmem:[#allocation2] sm:$0x3] %vm302_vm6, %v300_v28 }
 0x318   :  { %v383_v30 = vpop.f32.mrf.mxu0 }
 0x319   :  { %v384_v31 = vadd.f32 %v413_v29, %v383_v30 }
 0x31a   :  { %v457_v32 = vpop.f32.mrf.mxu0 }
 0x31b   :  { %388 = vrot.lane.b32.xlu1 %v384_v31, %s492_s12 }
 0x38d   :  { %v389_v33 = vpop.permute.xlu1 %388 }
 0x38e   :  { %392 = vst.msk [vmem:[#allocation2] sm:$0x3] %vm391_vm7, %v389_v33 }
 0x38f   :  { %476 = shalt.err (!%p473_p4)
}
 0x390   :  { %402 = dma.vmem_to_hbm [thread:$0]  %s400_s13, 32, %s604_s9, [#allocation3]  }
 0x391   :  { %485 = dma.done.wait [#allocation3], 32  }
 0x392   :  { %486 = vsyncadd [#allocation3], 4294967264 }
 0x393   :  { %406 = vsyncpa [#allocation3], 1 }

</bundles_post_ra>
